<compile_context>
chip_gen: v6e
topology: v6e:2x2x1
jax: 0.10.0
libtpu: 0.0.40
codegen_flags: <defaults>
</compile_context>

<pallas_src>
import functools

import jax
import jax.numpy as jnp
import numpy as np
from jax.experimental import pallas as pl
from jax.experimental.pallas import tpu as pltpu

# ----------------------------- configuration --------------------------------
N = 8          # number of nodes
E = 16         # number of edges
H = 32         # hidden_dim
EF = 4         # edge_feat_dim
NG = 16        # num_r_gaussian (> 1 -> GaussianSmearing path)
R_MIN, R_MAX = 0.0, 10.0

OUT_W = 128    # lane-dense packed output width: [h_out | x_out | 0-pad]

# Lane-dense weight-slab geometry: (128, 128) f32, four 32-lane column groups.
W_R, W_C = 128, 128
W1_ROWS = 2 * H + NG + EF          # 84

# (row, lane) offset of every segment inside the slab (all static).
POS = {
    "w1":       (0, 0),    # (84, 32) fused edge-MLP layer-1 weight
    "wn1":      (0, 32),   # (64, 32) fused node-MLP layer-1 weight
    "w2":       (0, 64),   # (32, 32) edge-MLP layer-2 weight
    "wx1":      (32, 64),  # (32, 32) x_mlp layer-1 weight
    "wn2":      (0, 96),   # (32, 32) node-MLP layer-2 weight
    "w_narrow": (96, 0),   # (32, 2)  [edge_inf weight | x_mlp last weight]
    "b1":       (88, 0),   # (1, 32)
    "b2":       (89, 0),   # (1, 32)
    "bx1":      (90, 0),   # (1, 32)
    "bn1":      (91, 0),   # (1, 32)
    "bn2":      (92, 0),   # (1, 32)
    "be":       (93, 0),   # (1, 1)   edge_inf bias
    "off":      (94, 0),   # (1, NG)  GaussianSmearing offsets
}


def _silu(v):
    return v * jax.nn.sigmoid(v)


# ------------------------------- the kernel ---------------------------------
def _en_base_layer_kernel(coeff, node_ref, eattr_ref, gid_ref, dst_ref,
                          w_ref, out_ref):
    f32 = jnp.float32

    def seg(name, rows, cols):
        r, c = POS[name]
        return w_ref[r:r + rows, c:c + cols]        # static slice into the slab

    node = node_ref[...]                            # (N, H+4) = [h | x | mask]
    h = node[:, :H]
    x = node[:, H:H + 3]
    mask = node[:, H + 3:H + 4]
    hx = node[:, :H + 3]                            # (N, H+3)

    ea = eattr_ref[...]                             # (E, EF)

    # Exact 0/1 gather matrix built in-VMEM from int32 indices (no E*N HBM slab).
    gid = gid_ref[...]                              # (2E, 1) int32: [dst ; src]
    node_iota = jax.lax.broadcasted_iota(jnp.int32, (2 * E, N), 1)
    g_both = (gid == node_iota).astype(f32)         # (2E, N)

    # Fused gathers: one MXU op gives [hi|xi] (rows :E) and [hj|xj] (rows E:).
    hx_both = jnp.dot(g_both, hx, preferred_element_type=f32)   # (2E, H+3)
    hi, xi = hx_both[:E, :H], hx_both[:E, H:H + 3]
    hj, xj = hx_both[E:, :H], hx_both[E:, H:H + 3]

    rel_x = xi - xj                                              # (E, 3)
    d_sq = jnp.sum(rel_x * rel_x, axis=-1, keepdims=True)        # (E, 1)
    d = jnp.sqrt(d_sq + 1e-8)

    # GaussianSmearing: exp(coeff * (d - offsets)^2)
    offs = seg("off", 1, NG)                                     # (1, NG)
    diff = d - offs
    d_feat = jnp.exp(coeff * diff * diff)                        # (E, NG)

    # edge MLP layer 1 (single fused matmul) + layer 2, act_last=True
    e_in = jnp.concatenate([hi, hj, d_feat, ea], axis=-1)        # (E, 2H+NG+EF)
    z = _silu(jnp.dot(e_in, seg("w1", W1_ROWS, H),
                      preferred_element_type=f32) + seg("b1", 1, H))
    mij = _silu(jnp.dot(z, seg("w2", H, H), preferred_element_type=f32)
                + seg("b2", 1, H))                               # (E, H)

    # x_mlp layer 1
    zx = _silu(jnp.dot(mij, seg("wx1", H, H), preferred_element_type=f32)
               + seg("bx1", 1, H))                               # (E, H)

    # Fused narrow heads: edge_inf (mij @ we) and x_mlp last layer (zx @ wx2)
    # as ONE (2E, H) @ (H, 2) dot; pick the diagonal blocks afterwards.
    narrow_in = jnp.concatenate([mij, zx], axis=0)               # (2E, H)
    narrow = jnp.dot(narrow_in, seg("w_narrow", H, 2),
                     preferred_element_type=f32)                 # (2E, 2)
    eij = jax.nn.sigmoid(narrow[:E, 0:1] + seg("be", 1, 1))      # (E, 1)
    xw = jnp.tanh(narrow[E:, 1:2])                               # (E, 1)

    inv = pl.reciprocal(d + 1.0, approx=False)                   # exact 1/(d+1)
    coef = rel_x * (xw * inv)                                    # (E, 3)

    # Scatter_sum over dst: transposed one-hot built directly (no XLU transpose,
    # plain MXU dot), fused for both the message and the coordinate update.
    dr = dst_ref[...]                                            # (1, E) int32
    edge_iota = jax.lax.broadcasted_iota(jnp.int32, (N, E), 0)
    sdst = (dr == edge_iota).astype(f32)                         # (N, E)
    payload = jnp.concatenate([mij * eij, coef], axis=-1)        # (E, H+3)
    scattered = jnp.dot(sdst, payload, preferred_element_type=f32)  # (N, H+3)
    mi = scattered[:, :H]
    delta_x = scattered[:, H:H + 3]

    # node MLP: layer 1 fused against pre-concatenated (2H, H) weight
    n_in = jnp.concatenate([mi, h], axis=-1)                     # (N, 2H)
    zn = _silu(jnp.dot(n_in, seg("wn1", 2 * H, H), preferred_element_type=f32)
               + seg("bn1", 1, H))
    hn = jnp.dot(zn, seg("wn2", H, H), preferred_element_type=f32) + seg("bn2", 1, H)

    h_out = hn * mask + h                                        # (N, H)
    x_out = delta_x * mask + x                                   # (N, 3)

    # lane-dense (N, 128) packed output slab: [h_out | x_out | 0]
    pad = jnp.zeros((h_out.shape[0], OUT_W - (H + 3)), f32)
    out_ref[...] = jnp.concatenate([h_out, x_out, pad], axis=-1)


# --------------------------- parameter packing (once) ------------------------
def pack_weight_slab(params):
    """Pack all weights/biases/constants into one lane-dense (128,128) slab.

    Called ONCE at parameter-init time (hoisted out of the per-call path).
    """
    offsets = np.linspace(R_MIN, R_MAX, NG, dtype=np.float32)[None, :]
    segs = {
        "w1": np.concatenate([params["w1_hi"], params["w1_hj"],
                              params["w1_d"], params["w1_ea"]], axis=0),
        "wn1": np.concatenate([params["wn1_mi"], params["wn1_h"]], axis=0),
        "w2": params["w2"],
        "wx1": params["wx1"],
        "wn2": params["wn2"],
        "w_narrow": np.concatenate([params["we"], params["wx2"]], axis=1),
        "b1": params["b1"], "b2": params["b2"], "bx1": params["bx1"],
        "bn1": params["bn1"], "bn2": params["bn2"], "be": params["be"],
        "off": offsets,
    }
    slab = np.zeros((W_R, W_C), np.float32)
    for name, a in segs.items():
        r, c = POS[name]
        a = np.asarray(a, np.float32)
        slab[r:r + a.shape[0], c:c + a.shape[1]] = a
    return jnp.asarray(slab)


# ------------------------------- wrapper -------------------------------------
@jax.jit
def en_base_layer(h, x, edge_index, gt_mask, edge_attr, w_slab):
    """Pallas implementation of EnBaseLayer.forward (weights pre-packed)."""
    n, hdim = h.shape
    src, dst = edge_index[0], edge_index[1]
    mask = gt_mask.astype(jnp.float32)[:, None]                  # (N, 1)

    # per-node slab [h | x | mask] and tiny per-edge index arrays
    node_slab = jnp.concatenate([h, x, mask], axis=-1)           # (N, H+4)
    gather_ids = jnp.concatenate([dst, src], axis=0).astype(jnp.int32)[:, None]
    dst_row = dst.astype(jnp.int32)[None, :]                     # (1, E)

    step = (R_MAX - R_MIN) / (NG - 1)
    coeff = -0.5 / (step ** 2)
    kernel = functools.partial(_en_base_layer_kernel, coeff)

    vmem = pl.BlockSpec(memory_space=pltpu.MemorySpace.VMEM)
    packed = pl.pallas_call(
        kernel,
        out_shape=jax.ShapeDtypeStruct((n, OUT_W), jnp.float32),
        in_specs=[vmem, vmem, vmem, vmem, vmem],
        out_specs=vmem,
    )(node_slab, edge_attr.astype(jnp.float32), gather_ids, dst_row, w_slab)

    # unpack the lane-dense output slab
    return packed[:, :hdim], packed[:, hdim:hdim + 3]


# --------------------------- reference (plain JAX) ---------------------------
def en_base_layer_ref(h, x, edge_index, gt_mask, edge_attr, params):
    src, dst = edge_index[0], edge_index[1]
    hi, hj = h[dst], h[src]
    rel_x = x[dst] - x[src]
    d_sq = jnp.sum(rel_x ** 2, -1, keepdims=True)
    d = jnp.sqrt(d_sq + 1e-8)
    offsets = jnp.linspace(R_MIN, R_MAX, NG, dtype=jnp.float32)[None, :]
    step = (R_MAX - R_MIN) / (NG - 1)
    coeff = -0.5 / (step ** 2)
    d_feat = jnp.exp(coeff * (d - offsets) ** 2)
    edge_feat = jnp.concatenate([d_feat, edge_attr], -1)

    w1 = jnp.concatenate(
        [params["w1_hi"], params["w1_hj"], params["w1_d"], params["w1_ea"]], 0)
    e_in = jnp.concatenate([hi, hj, edge_feat], -1)
    z = _silu(e_in @ w1 + params["b1"])
    mij = _silu(z @ params["w2"] + params["b2"])
    eij = jax.nn.sigmoid(mij @ params["we"] + params["be"])

    mi = jax.ops.segment_sum(mij * eij, dst, num_segments=h.shape[0])
    wn1 = jnp.concatenate([params["wn1_mi"], params["wn1_h"]], 0)
    node_in = jnp.concatenate([mi, h], -1)
    hn = _silu(node_in @ wn1 + params["bn1"]) @ params["wn2"] + params["bn2"]
    mask = gt_mask.astype(jnp.float32)[:, None]
    h_out = hn * mask + h

    xw = jnp.tanh(_silu(mij @ params["wx1"] + params["bx1"]) @ params["wx2"])
    delta_x = jax.ops.segment_sum(rel_x / (d + 1.0) * xw, dst,
                                  num_segments=h.shape[0])
    x_out = delta_x * mask + x
    return h_out, x_out


# ---------------------------------- main -------------------------------------
def _make_params(key):
    ks = jax.random.split(key, 16)
    f = jnp.float32

    def w(k, shape, scale=0.1):
        return (scale * jax.random.normal(k, shape)).astype(f)

    return {
        # edge_mlp layer 1: (2H + NG + EF) -> H, stored split by concat block
        "w1_hi": w(ks[0], (H, H)),
        "w1_hj": w(ks[1], (H, H)),
        "w1_d": w(ks[2], (NG, H)),
        "w1_ea": w(ks[3], (EF, H)),
        "b1": w(ks[4], (1, H)),
        # edge_mlp layer 2: H -> H
        "w2": w(ks[5], (H, H)),
        "b2": w(ks[6], (1, H)),
        # edge_inf: H -> 1
        "we": w(ks[7], (H, 1)),
        "be": w(ks[8], (1, 1)),
        # x_mlp: H -> H -> 1 (last layer xavier_uniform gain=0.001, no bias)
        "wx1": w(ks[9], (H, H)),
        "bx1": w(ks[10], (1, H)),
        "wx2": w(ks[11], (H, 1), scale=0.001),
        # node_mlp: 2H -> H -> H, layer 1 split by concat block
        "wn1_mi": w(ks[12], (H, H)),
        "wn1_h": w(ks[13], (H, H)),
        "bn1": w(ks[14], (1, H)),
        "wn2": w(ks[15], (H, H)),
        "bn2": jnp.zeros((1, H), f),
    }


if __name__ == "__main__":
    key = jax.random.PRNGKey(0)
    k_h, k_x, k_src, k_dst, k_ea, k_mask, k_p = jax.random.split(key, 7)

    h = jax.random.normal(k_h, (N, H), dtype=jnp.float32)
    x = jax.random.normal(k_x, (N, 3), dtype=jnp.float32)
    src = jax.random.randint(k_src, (E,), 0, N)
    dst = jax.random.randint(k_dst, (E,), 0, N)
    edge_index = jnp.stack([src, dst], axis=0)          # (2, E), like PyTorch
    edge_attr = jax.random.normal(k_ea, (E, EF), dtype=jnp.float32)
    gt_mask = jax.random.bernoulli(k_mask, 0.7, (N,))   # bool (N,)
    params = _make_params(k_p)

    # pack the weight slab ONCE (hoisted out of the per-call path)
    w_slab = pack_weight_slab(params)

    h_out, x_out = en_base_layer(h, x, edge_index, gt_mask, edge_attr, w_slab)
    jax.block_until_ready((h_out, x_out))

    h_ref, x_ref = en_base_layer_ref(h, x, edge_index, gt_mask, edge_attr, params)
    np.testing.assert_allclose(np.asarray(h_out), np.asarray(h_ref),
                               rtol=1e-5, atol=1e-5)
    np.testing.assert_allclose(np.asarray(x_out), np.asarray(x_ref),
                               rtol=1e-5, atol=1e-5)

    print("KERNEL_OK")
</pallas_src>

<mosaic_0001>
module attributes {stable_mosaic.version = 11 : i64} {
  func.func @_en_base_layer_kernel(%arg0: memref<8x36xf32, #tpu.memory_space<vmem>>, %arg1: memref<16x4xf32, #tpu.memory_space<vmem>>, %arg2: memref<32x1xi32, #tpu.memory_space<vmem>>, %arg3: memref<1x16xi32, #tpu.memory_space<vmem>>, %arg4: memref<128x128xf32, #tpu.memory_space<vmem>>, %arg5: memref<8x128xf32, #tpu.memory_space<vmem>>) attributes {dimension_semantics = [], scalar_prefetch = 0 : i64, scratch_operands = 0 : i64, tpu.core_type = #tpu.core_type<tc>} {
    %c0 = arith.constant 0 : index
    %c0_0 = arith.constant 0 : index
    %0 = vector.load %arg0[%c0, %c0_0] : memref<8x36xf32, #tpu.memory_space<vmem>>, vector<8x36xf32>
    %1 = vector.extract_strided_slice %0 {offsets = [0, 0], sizes = [8, 32], strides = [1, 1]} : vector<8x36xf32> to vector<8x32xf32>
    %2 = vector.extract_strided_slice %0 {offsets = [0, 32], sizes = [8, 3], strides = [1, 1]} : vector<8x36xf32> to vector<8x3xf32>
    %3 = vector.extract_strided_slice %0 {offsets = [0, 35], sizes = [8, 1], strides = [1, 1]} : vector<8x36xf32> to vector<8x1xf32>
    %4 = vector.extract_strided_slice %0 {offsets = [0, 0], sizes = [8, 35], strides = [1, 1]} : vector<8x36xf32> to vector<8x35xf32>
    %c0_1 = arith.constant 0 : index
    %c0_2 = arith.constant 0 : index
    %5 = vector.load %arg1[%c0_1, %c0_2] : memref<16x4xf32, #tpu.memory_space<vmem>>, vector<16x4xf32>
    %c0_3 = arith.constant 0 : index
    %c0_4 = arith.constant 0 : index
    %6 = vector.load %arg2[%c0_3, %c0_4] : memref<32x1xi32, #tpu.memory_space<vmem>>, vector<32x1xi32>
    %7 = tpu.iota {dimensions = array<i32: 1>} : vector<32x8xi32>
    %8 = vector.broadcast %6 : vector<32x1xi32> to vector<32x8xi32>
    %9 = arith.cmpi eq, %8, %7 : vector<32x8xi32>
    %10 = arith.extui %9 : vector<32x8xi1> to vector<32x8xi32>
    %11 = arith.sitofp %10 : vector<32x8xi32> to vector<32x8xf32>
    %cst = arith.constant dense<0.000000e+00> : vector<32x35xf32>
    %12 = tpu.matmul %11, %4, %cst {dimension_numbers = #tpu.dot_dimension_numbers<[1], [0], [0], [1], [0, 0, 1, 1], [], []>} : vector<32x8xf32>, vector<8x35xf32>, vector<32x35xf32> -> vector<32x35xf32>
    %13 = vector.extract_strided_slice %12 {offsets = [0, 0], sizes = [16, 32], strides = [1, 1]} : vector<32x35xf32> to vector<16x32xf32>
    %14 = vector.extract_strided_slice %12 {offsets = [0, 32], sizes = [16, 3], strides = [1, 1]} : vector<32x35xf32> to vector<16x3xf32>
    %15 = vector.extract_strided_slice %12 {offsets = [16, 0], sizes = [16, 32], strides = [1, 1]} : vector<32x35xf32> to vector<16x32xf32>
    %16 = vector.extract_strided_slice %12 {offsets = [16, 32], sizes = [16, 3], strides = [1, 1]} : vector<32x35xf32> to vector<16x3xf32>
    %17 = arith.subf %14, %16 : vector<16x3xf32>
    %18 = arith.mulf %17, %17 : vector<16x3xf32>
    %cst_5 = arith.constant dense<0.000000e+00> : vector<16xf32>
    %19 = vector.multi_reduction <add>, %18, %cst_5 [1] : vector<16x3xf32> to vector<16xf32>
    %20 = vector.shape_cast %19 : vector<16xf32> to vector<16x1xf32>
    %cst_6 = arith.constant 9.99999993E-9 : f32
    %21 = vector.broadcast %cst_6 : f32 to vector<16x1xf32>
    %22 = arith.addf %20, %21 : vector<16x1xf32>
    %23 = math.sqrt %22 : vector<16x1xf32>
    %c94 = arith.constant 94 : index
    %c0_7 = arith.constant 0 : index
    %24 = vector.load %arg4[%c94, %c0_7] : memref<128x128xf32, #tpu.memory_space<vmem>>, vector<1x16xf32>
    %25 = vector.broadcast %23 : vector<16x1xf32> to vector<16x16xf32>
    %26 = vector.broadcast %24 : vector<1x16xf32> to vector<16x16xf32>
    %27 = arith.subf %25, %26 : vector<16x16xf32>
    %cst_8 = arith.constant -1.125000e+00 : f32
    %28 = vector.broadcast %cst_8 : f32 to vector<16x16xf32>
    %29 = arith.mulf %28, %27 : vector<16x16xf32>
    %30 = arith.mulf %29, %27 : vector<16x16xf32>
    %31 = math.exp %30 : vector<16x16xf32>
    %32 = tpu.concatenate %13, %15, %31, %5 in 1 : vector<16x32xf32>, vector<16x32xf32>, vector<16x16xf32>, vector<16x4xf32> -> vector<16x84xf32>
    %c0_9 = arith.constant 0 : index
    %c0_10 = arith.constant 0 : index
    %33 = vector.load %arg4[%c0_9, %c0_10] : memref<128x128xf32, #tpu.memory_space<vmem>>, vector<84x32xf32>
    %cst_11 = arith.constant dense<0.000000e+00> : vector<16x32xf32>
    %34 = tpu.matmul %32, %33, %cst_11 {dimension_numbers = #tpu.dot_dimension_numbers<[1], [0], [0], [1], [0, 0, 1, 1], [], []>} : vector<16x84xf32>, vector<84x32xf32>, vector<16x32xf32> -> vector<16x32xf32>
    %c88 = arith.constant 88 : index
    %c0_12 = arith.constant 0 : index
    %35 = vector.load %arg4[%c88, %c0_12] : memref<128x128xf32, #tpu.memory_space<vmem>>, vector<1x32xf32>
    %36 = vector.broadcast %35 : vector<1x32xf32> to vector<16x32xf32>
    %37 = arith.addf %34, %36 : vector<16x32xf32>
    %38 = arith.negf %37 : vector<16x32xf32>
    %39 = math.exp %38 : vector<16x32xf32>
    %cst_13 = arith.constant 1.000000e+00 : f32
    %40 = vector.broadcast %cst_13 : f32 to vector<16x32xf32>
    %41 = arith.addf %40, %39 : vector<16x32xf32>
    %42 = arith.divf %40, %41 : vector<16x32xf32>
    %43 = arith.mulf %37, %42 : vector<16x32xf32>
    %c0_14 = arith.constant 0 : index
    %c64 = arith.constant 64 : index
    %44 = vector.load %arg4[%c0_14, %c64] : memref<128x128xf32, #tpu.memory_space<vmem>>, vector<32x32xf32>
    %cst_15 = arith.constant dense<0.000000e+00> : vector<16x32xf32>
    %45 = tpu.matmul %43, %44, %cst_15 {dimension_numbers = #tpu.dot_dimension_numbers<[1], [0], [0], [1], [0, 0, 1, 1], [], []>} : vector<16x32xf32>, vector<32x32xf32>, vector<16x32xf32> -> vector<16x32xf32>
    %c89 = arith.constant 89 : index
    %c0_16 = arith.constant 0 : index
    %46 = vector.load %arg4[%c89, %c0_16] : memref<128x128xf32, #tpu.memory_space<vmem>>, vector<1x32xf32>
    %47 = vector.broadcast %46 : vector<1x32xf32> to vector<16x32xf32>
    %48 = arith.addf %45, %47 : vector<16x32xf32>
    %49 = arith.negf %48 : vector<16x32xf32>
    %50 = math.exp %49 : vector<16x32xf32>
    %cst_17 = arith.constant 1.000000e+00 : f32
    %51 = vector.broadcast %cst_17 : f32 to vector<16x32xf32>
    %52 = arith.addf %51, %50 : vector<16x32xf32>
    %53 = arith.divf %51, %52 : vector<16x32xf32>
    %54 = arith.mulf %48, %53 : vector<16x32xf32>
    %c32 = arith.constant 32 : index
    %c64_18 = arith.constant 64 : index
    %55 = vector.load %arg4[%c32, %c64_18] : memref<128x128xf32, #tpu.memory_space<vmem>>, vector<32x32xf32>
    %cst_19 = arith.constant dense<0.000000e+00> : vector<16x32xf32>
    %56 = tpu.matmul %54, %55, %cst_19 {dimension_numbers = #tpu.dot_dimension_numbers<[1], [0], [0], [1], [0, 0, 1, 1], [], []>} : vector<16x32xf32>, vector<32x32xf32>, vector<16x32xf32> -> vector<16x32xf32>
    %c90 = arith.constant 90 : index
    %c0_20 = arith.constant 0 : index
    %57 = vector.load %arg4[%c90, %c0_20] : memref<128x128xf32, #tpu.memory_space<vmem>>, vector<1x32xf32>
    %58 = vector.broadcast %57 : vector<1x32xf32> to vector<16x32xf32>
    %59 = arith.addf %56, %58 : vector<16x32xf32>
    %60 = arith.negf %59 : vector<16x32xf32>
    %61 = math.exp %60 : vector<16x32xf32>
    %cst_21 = arith.constant 1.000000e+00 : f32
    %62 = vector.broadcast %cst_21 : f32 to vector<16x32xf32>
    %63 = arith.addf %62, %61 : vector<16x32xf32>
    %64 = arith.divf %62, %63 : vector<16x32xf32>
    %65 = arith.mulf %59, %64 : vector<16x32xf32>
    %66 = tpu.concatenate %54, %65 in 0 : vector<16x32xf32>, vector<16x32xf32> -> vector<32x32xf32>
    %c96 = arith.constant 96 : index
    %c0_22 = arith.constant 0 : index
    %67 = vector.load %arg4[%c96, %c0_22] : memref<128x128xf32, #tpu.memory_space<vmem>>, vector<32x2xf32>
    %cst_23 = arith.constant dense<0.000000e+00> : vector<32x2xf32>
    %68 = tpu.matmul %66, %67, %cst_23 {dimension_numbers = #tpu.dot_dimension_numbers<[1], [0], [0], [1], [0, 0, 1, 1], [], []>} : vector<32x32xf32>, vector<32x2xf32>, vector<32x2xf32> -> vector<32x2xf32>
    %69 = vector.extract_strided_slice %68 {offsets = [0, 0], sizes = [16, 1], strides = [1, 1]} : vector<32x2xf32> to vector<16x1xf32>
    %c93 = arith.constant 93 : index
    %c0_24 = arith.constant 0 : index
    %70 = vector.load %arg4[%c93, %c0_24] : memref<128x128xf32, #tpu.memory_space<vmem>>, vector<1x1xf32>
    %71 = vector.broadcast %70 : vector<1x1xf32> to vector<16x1xf32>
    %72 = arith.addf %69, %71 : vector<16x1xf32>
    %73 = arith.negf %72 : vector<16x1xf32>
    %74 = math.exp %73 : vector<16x1xf32>
    %cst_25 = arith.constant 1.000000e+00 : f32
    %75 = vector.broadcast %cst_25 : f32 to vector<16x1xf32>
    %76 = arith.addf %75, %74 : vector<16x1xf32>
    %77 = arith.divf %75, %76 : vector<16x1xf32>
    %78 = vector.extract_strided_slice %68 {offsets = [16, 1], sizes = [16, 1], strides = [1, 1]} : vector<32x2xf32> to vector<16x1xf32>
    %79 = math.tanh %78 : vector<16x1xf32>
    %cst_26 = arith.constant 1.000000e+00 : f32
    %80 = vector.broadcast %cst_26 : f32 to vector<16x1xf32>
    %81 = arith.addf %23, %80 : vector<16x1xf32>
    %82 = tpu.reciprocal %81 : vector<16x1xf32> -> vector<16x1xf32>
    %83 = arith.mulf %79, %82 : vector<16x1xf32>
    %84 = vector.broadcast %83 : vector<16x1xf32> to vector<16x3xf32>
    %85 = arith.mulf %17, %84 : vector<16x3xf32>
    %c0_27 = arith.constant 0 : index
    %c0_28 = arith.constant 0 : index
    %86 = vector.load %arg3[%c0_27, %c0_28] : memref<1x16xi32, #tpu.memory_space<vmem>>, vector<1x16xi32>
    %87 = tpu.iota {dimensions = array<i32: 0>} : vector<8x16xi32>
    %88 = vector.broadcast %86 : vector<1x16xi32> to vector<8x16xi32>
    %89 = arith.cmpi eq, %88, %87 : vector<8x16xi32>
    %90 = arith.extui %89 : vector<8x16xi1> to vector<8x16xi32>
    %91 = arith.sitofp %90 : vector<8x16xi32> to vector<8x16xf32>
    %92 = vector.broadcast %77 : vector<16x1xf32> to vector<16x32xf32>
    %93 = arith.mulf %54, %92 : vector<16x32xf32>
    %94 = tpu.concatenate %93, %85 in 1 : vector<16x32xf32>, vector<16x3xf32> -> vector<16x35xf32>
    %cst_29 = arith.constant dense<0.000000e+00> : vector<8x35xf32>
    %95 = tpu.matmul %91, %94, %cst_29 {dimension_numbers = #tpu.dot_dimension_numbers<[1], [0], [0], [1], [0, 0, 1, 1], [], []>} : vector<8x16xf32>, vector<16x35xf32>, vector<8x35xf32> -> vector<8x35xf32>
    %96 = vector.extract_strided_slice %95 {offsets = [0, 0], sizes = [8, 32], strides = [1, 1]} : vector<8x35xf32> to vector<8x32xf32>
    %97 = vector.extract_strided_slice %95 {offsets = [0, 32], sizes = [8, 3], strides = [1, 1]} : vector<8x35xf32> to vector<8x3xf32>
    %98 = tpu.concatenate %96, %1 in 1 : vector<8x32xf32>, vector<8x32xf32> -> vector<8x64xf32>
    %c0_30 = arith.constant 0 : index
    %c32_31 = arith.constant 32 : index
    %99 = vector.load %arg4[%c0_30, %c32_31] : memref<128x128xf32, #tpu.memory_space<vmem>>, vector<64x32xf32>
    %cst_32 = arith.constant dense<0.000000e+00> : vector<8x32xf32>
    %100 = tpu.matmul %98, %99, %cst_32 {dimension_numbers = #tpu.dot_dimension_numbers<[1], [0], [0], [1], [0, 0, 1, 1], [], []>} : vector<8x64xf32>, vector<64x32xf32>, vector<8x32xf32> -> vector<8x32xf32>
    %c91 = arith.constant 91 : index
    %c0_33 = arith.constant 0 : index
    %101 = vector.load %arg4[%c91, %c0_33] : memref<128x128xf32, #tpu.memory_space<vmem>>, vector<1x32xf32>
    %102 = vector.broadcast %101 : vector<1x32xf32> to vector<8x32xf32>
    %103 = arith.addf %100, %102 : vector<8x32xf32>
    %104 = arith.negf %103 : vector<8x32xf32>
    %105 = math.exp %104 : vector<8x32xf32>
    %cst_34 = arith.constant 1.000000e+00 : f32
    %106 = vector.broadcast %cst_34 : f32 to vector<8x32xf32>
    %107 = arith.addf %106, %105 : vector<8x32xf32>
    %108 = arith.divf %106, %107 : vector<8x32xf32>
    %109 = arith.mulf %103, %108 : vector<8x32xf32>
    %c0_35 = arith.constant 0 : index
    %c96_36 = arith.constant 96 : index
    %110 = vector.load %arg4[%c0_35, %c96_36] : memref<128x128xf32, #tpu.memory_space<vmem>>, vector<32x32xf32>
    %cst_37 = arith.constant dense<0.000000e+00> : vector<8x32xf32>
    %111 = tpu.matmul %109, %110, %cst_37 {dimension_numbers = #tpu.dot_dimension_numbers<[1], [0], [0], [1], [0, 0, 1, 1], [], []>} : vector<8x32xf32>, vector<32x32xf32>, vector<8x32xf32> -> vector<8x32xf32>
    %c92 = arith.constant 92 : index
    %c0_38 = arith.constant 0 : index
    %112 = vector.load %arg4[%c92, %c0_38] : memref<128x128xf32, #tpu.memory_space<vmem>>, vector<1x32xf32>
    %113 = vector.broadcast %112 : vector<1x32xf32> to vector<8x32xf32>
    %114 = arith.addf %111, %113 : vector<8x32xf32>
    %115 = vector.broadcast %3 : vector<8x1xf32> to vector<8x32xf32>
    %116 = arith.mulf %114, %115 : vector<8x32xf32>
    %117 = arith.addf %116, %1 : vector<8x32xf32>
    %118 = vector.broadcast %3 : vector<8x1xf32> to vector<8x3xf32>
    %119 = arith.mulf %97, %118 : vector<8x3xf32>
    %120 = arith.addf %119, %2 : vector<8x3xf32>
    %cst_39 = arith.constant 0.000000e+00 : f32
    %121 = vector.broadcast %cst_39 : f32 to vector<8x93xf32>
    %122 = tpu.concatenate %117, %120, %121 in 1 : vector<8x32xf32>, vector<8x3xf32>, vector<8x93xf32> -> vector<8x128xf32>
    %c0_40 = arith.constant 0 : index
    %c0_41 = arith.constant 0 : index
    %123 = vector.load %arg5[%c0_40, %c0_41] : memref<8x128xf32, #tpu.memory_space<vmem>>, vector<8x128xf32>
    tpu.vector_store %arg5[%c0_40, %c0_41], %122 {strides = array<i32>} : memref<8x128xf32, #tpu.memory_space<vmem>>, vector<8x128xf32>,
    return
  }
}

</mosaic_0001>

<bundles_post_ra>
// kernel: en_base_layer.1
= control target key start
LH: loop header
LB: loop body
LE: loop exit
PB: predicated region body
PF: predicated region fallthrough
CT: control target
= control target key end

     0   :  { %v1319_v0 = vmov 0   ;;  %v27_v6 = vlaneseq  ;;  %vm53_vm0 = vcmask 64512   ;;  %v1320_v10 = vmov 0.0   ;;  %s1323_s27 = smov 64   ;;  %s1324_s30 = smov 80   ;;  %s1612_s2 = inlined_call_operand.vmem [shape: s32[32,1], index: 2, kind: input, shape index: {}]   ;;  %s1613_s0 = inlined_call_operand.vmem [shape: f32[8,36], index: 0, kind: input, shape index: {}]   ;;  %s1614_s4 = inlined_call_operand.vmem [shape: f32[128,128], index: 4, kind: input, shape index: {}]   ;;  %s1615_s1 = inlined_call_operand.vmem [shape: f32[16,4], index: 1, kind: input, shape index: {}]   ;;  %s1616_s3 = inlined_call_operand.vmem [shape: s32[1,16], index: 3, kind: input, shape index: {}]   ;;  %s1617_s5 = inlined_call_operand.vmem [shape: f32[8,128], index: 5, kind: output, shape index: {}]  }
   0x1   :  { %1261 = vset.pattern.permute.xlu1 %v1319_v0  ;;  %1260 = vset.pattern.permute.xlu0 %v1319_v0  ;;  %v25_v1 = vld [vmem:[%s1612_s2 + $0x10] sm:$0xff]  ;;  %v23_v2 = vld [vmem:[%s1612_s2] sm:$0xff]  ;;  %v26_v4 = vld [vmem:[%s1612_s2 + $0x18] sm:$0xff]  ;;  %vm163_vm5 = vcmask 23552   ;;  %vm257_vm6 = vcmask 1043456   ;;  %vm225_vm11 = vcmask 261120  }
   0x2   :  { %36 = vperm.xlu1 %1261, %v25_v1   ;;  %30 = vperm.xlu0 %1260, %v23_v2   ;;  %v1369_v3 = vld [vmem:[%s1613_s0] sm:$0xff]  ;;  %v24_v5 = vld [vmem:[%s1612_s2 + $0x8] sm:$0xff]  ;;  %v28_v7 = vand.u32 127, %v27_v6  ;;  %s1321_s0 = smov 96   ;;  %s1322_s2 = smov 32   ;;  %v1414_v32 = vld [vmem:[%s1614_s4 + $0x38] sm:$0xff] }
   0x3   :  { %1145 = vmatprep.subr.mxu1 %v1369_v3  ;;  %v244_v29 = vld [vmem:[%s1614_s4 + $0x50] sm:$0xf]  ;;  %v243_v30 = vld [vmem:[%s1614_s4 + $0x48] sm:$0xff]  ;;  %v242_v31 = vld [vmem:[%s1614_s4 + $0x40] sm:$0xff]  ;;  %vm228_vm12 = vcmask 523264   ;;  %vm231_vm13 = vcmask 654336  }
   0x4   :  { %1146 = vmatpush3.msra.mxu1 %v1369_v3  ;;  %v1419_v33 = vld [vmem:[%s1614_s4 + $0x30] sm:$0xff]  ;;  %v1426_v34 = vld [vmem:[%s1614_s4 + $0x28] sm:$0xff]  ;;  %v1433_v35 = vld [vmem:[%s1614_s4 + $0x20] sm:$0xff]  ;;  %vm250_vm14 = vcmask 687104   ;;  %vm1326_vm15 = vmmov 0  }
   0x5   :  { %1153 = vmatprep.subr.msk.mxu1 %vm257_vm6, %v244_v29  ;;  %v1058_v42 = vld [vmem:[%s1614_s4 + $0x5e] ss:$0 sm:$0xff]  ;;  %v1458_v60 = vld [vmem:[%s1614_s4 + $0x10] sm:$0xff]  ;;  %v1465_v61 = vld [vmem:[%s1614_s4 + $0x8] sm:$0xff] }
   0x6   :  { %39 = vperm.xlu1 %1261, %v26_v4   ;;  %33 = vperm.xlu0 %1260, %v24_v5   ;;  %v1451_v59 = vld [vmem:[%s1614_s4 + $0x18] sm:$0xff]  ;;  %v1472_v62 = vld [vmem:[%s1614_s4] sm:$0xff]  ;;  %v22_v1 = vld [vmem:[%s1615_s1 + $0x8] sm:$0xff] }
   0x7   :  { %v21_v4 = vld [vmem:[%s1615_s1] sm:$0xff] }
  0x7d   :  { %v37_v8 = vpop.permute.xlu1 %36  ;;  %v31_v9 = vpop.permute.xlu0 %30 }
  0x7e   :  { %vm41_vm1 = vcmp.eq.s32.totalorder %v31_v9, %v28_v7  ;;  %vm43_vm2 = vcmp.eq.s32.totalorder %v37_v8, %v28_v7 }
  0x7f   :  { %v1050_v11 = vsel %vm41_vm1, 1.0, %v1320_v10  ;;  %v1052_v14 = vsel %vm43_vm2, 1.0, %v1320_v10  ;;  %vm748_vm1 = vcmask 130048   ;;  %vm1043_vm2 = vcmask 285696  }
  0x80   :  { %1147 = vmatprep.mubr.msk.f32.mxu1 %vm53_vm0, %v1050_v11 }
  0x81   :  { %v40_v12 = vpop.permute.xlu1 %39  ;;  %v34_v13 = vpop.permute.xlu0 %33 }
  0x82   :  { %vm42_vm3 = vcmp.eq.s32.totalorder %v34_v13, %v28_v7  ;;  %vm44_vm4 = vcmp.eq.s32.totalorder %v40_v12, %v28_v7 }
  0x83   :  { %v1051_v15 = vsel %vm42_vm3, 1.0, %v1320_v10  ;;  %v1053_v16 = vsel %vm44_vm4, 1.0, %v1320_v10 }
  0x84   :  { %1148 = vmatmul.mubr.msk.f32.vlgmr.msra.gmra.mxu1 %vm53_vm0, %v1051_v15 }
  0x85   :  { %1150 = vmatprep.mubr.msk.f32.mxu1 %vm53_vm0, %v1052_v14  ;;  %1154 = vmatpush3.msk.msra.mxu1 %vm257_vm6, %v244_v29 }
  0x86   :  { %1155 = vmatprep.subr.mxu1 %v243_v30 }
  0x87   :  { %1156 = vmatpush3.msra.mxu1 %v243_v30 }
  0x88   :  { %1151 = vmatmul.mubr.msk.f32.gmra.mxu1 %vm53_vm0, %v1053_v16  ;;  %1157 = vmatprep.subr.mxu1 %v242_v31 }
  0x89   :  { %1158 = vmatpush3.msra.mxu1 %v242_v31 }
  0x8a   :  { %1159 = vmatprep.subr.mxu1 %v1414_v32 }
  0x8b   :  { %1160 = vmatpush3.msra.mxu1 %v1414_v32 }
  0x8c   :  { %1161 = vmatprep.subr.mxu1 %v1419_v33 }
  0x8d   :  { %1162 = vmatpush3.msra.mxu1 %v1419_v33 }
  0x8e   :  { %1163 = vmatprep.subr.mxu1 %v1426_v34 }
  0x8f   :  { %1164 = vmatpush3.msra.mxu1 %v1426_v34 }
  0x90   :  { %1165 = vmatprep.subr.mxu1 %v1433_v35 }
  0x91   :  { %1166 = vmatpush3.msra.mxu1 %v1433_v35 }
  0x92   :  { %1167 = vmatprep.subr.mxu1 %v1451_v59 }
  0x93   :  { %1168 = vmatpush3.msra.mxu1 %v1451_v59 }
  0x94   :  { %1169 = vmatprep.subr.mxu1 %v1458_v60 }
  0x95   :  { %1170 = vmatpush3.msra.mxu1 %v1458_v60 }
  0x96   :  { %1171 = vmatprep.subr.mxu1 %v1465_v61 }
  0x97   :  { %1172 = vmatpush3.msra.mxu1 %v1465_v61 }
  0x98   :  { %1173 = vmatprep.subr.mxu1 %v1472_v62 }
  0x99   :  { %1174 = vmatpush3.msra.mxu1 %v1472_v62 }
  0x9a   :  { %1214 = vmatprep.subr.mxu1 %v1320_v10 }
 0x144   :  { %v1384_v17 = vpop.f32.mrf.mxu1 }
 0x146   :  { %v1386_v18 = vpop.f32.mrf.mxu1 }
 0x148   :  { %v1152_v19 = vpop.f32.mrf.mxu1 }
 0x149   :  { %v1389_v20 = vsub.f32 %v1384_v17, %v1152_v19 }
 0x14a   :  { %v142_v21 = vpop.f32.mrf.mxu1 }
 0x14b   :  { %v154_v22 = vmul.f32 %v1389_v20, %v1389_v20  ;;  %v1394_v23 = vsub.f32 %v1386_v18, %v142_v21 }
 0x14d   :  { %v153_v24 = vmul.f32 %v1394_v23, %v1394_v23  ;;  %159 = vrot.lane.b32.xlu1 %v154_v22, %s1321_s0 }
 0x14f   :  { %157 = vrot.lane.b32.xlu0 %v153_v24, %s1321_s0 }
 0x1bf   :  { %v160_v25 = vpop.permute.xlu1 %159 }
 0x1c0   :  { %v167_v26 = vsel %vm163_vm5, %v160_v25, 0.0 }
 0x1c1   :  { %168 = vadd.xlane.f32.xlu1 %v167_v26  ;;  %v158_v27 = vpop.permute.xlu0 %157 }
 0x1c2   :  { %v164_v28 = vsel %vm163_vm5, %v158_v27, 0.0 }
 0x1c3   :  { %165 = vadd.xlane.f32.xlu0 %v164_v28 }
 0x1d2   :  { %205 = vrot.lane.b32.xlu1 %v1152_v19, %s1322_s2 }
 0x1d9   :  { %203 = vrot.lane.b32.xlu0 %v142_v21, %s1322_s2 }
 0x24a   :  { %v169_v36 = vpop.xlane.xlu1 %168 }
 0x24b   :  { %v171_v37 = vadd.f32 1e-08, %v169_v36 }
 0x24c   :  { %v166_v38 = vpop.xlane.xlu0 %165 }
 0x24d   :  { %1267 = vrsqrt.f32 %v171_v37  ;;  %v170_v39 = vadd.f32 1e-08, %v166_v38  ;;  %vm181_vm7 = vcmp.eq.f32.partialorder %v171_v37, inf  ;;  %v184_v43 = vand.u32 2147483648, %v171_v37 }
 0x24e   :  { %vm183_vm8 = vcmp.eq.f32.partialorder %v171_v37, 0.0  ;;  %v206_v5 = vpop.permute.xlu1 %205 }
 0x24f   :  { %1269 = vrsqrt.f32 %v170_v39  ;;  %vm174_vm9 = vcmp.eq.f32.partialorder %v170_v39, inf  ;;  %v177_v49 = vand.u32 2147483648, %v170_v39  ;;  %vm176_vm10 = vcmp.eq.f32.partialorder %v170_v39, 0.0 }
 0x250   :  { %v204_v7 = vpop.permute.xlu0 %203  ;;  %v227_v13 = vsel %vm225_vm11, %v1384_v17, %v206_v5  ;;  %v1059_v17 = vld [vmem:[%s1614_s4 + $0x58] ss:$0 sm:$0xff] }
 0x251   :  { %v226_v11 = vsel %vm225_vm11, %v1386_v18, %v204_v7 }
 0x25a   :  { %v1268_v40 = vpop.eup %1267 }
 0x25b   :  { %v180_v41 = vmul.f32 %v1268_v40, %v171_v37 }
 0x25c   :  { %v1270_v44 = vpop.eup %1269 }
 0x25d   :  { %v182_v45 = vsel %vm181_vm7, %v171_v37, %v180_v41  ;;  %v173_v47 = vmul.f32 %v1270_v44, %v170_v39 }
 0x25e   :  { %v1442_v46 = vsel %vm183_vm8, %v184_v43, %v182_v45 }
 0x25f   :  { %v192_v48 = vsub.f32 %v1442_v46, %v1058_v42  ;;  %v175_v50 = vsel %vm174_vm9, %v170_v39, %v173_v47 }
 0x260   :  { %v1445_v52 = vsel %vm176_vm10, %v177_v49, %v175_v50  ;;  %v593_v49 = vld [vmem:[%s1614_s4 + $0x78] sm:$0xff] }
 0x261   :  { %v194_v51 = vmul.f32 -1.125, %v192_v48  ;;  %v191_v53 = vsub.f32 %v1445_v52, %v1058_v42  ;;  %v1065_v50 = vld [vmem:[%s1614_s4 + $0x59] ss:$0 sm:$0xff] }
 0x263   :  { %v196_v54 = vmul.f32 %v194_v51, %v192_v48  ;;  %v193_v55 = vmul.f32 -1.125, %v191_v53 }
 0x265   :  { %v199_v56 = vmul.f32 1.442695, %v196_v54  ;;  %v195_v57 = vmul.f32 %v193_v55, %v191_v53 }
 0x267   :  { %1271 = vpow2.f32 %v199_v56  ;;  %v197_v58 = vmul.f32 1.442695, %v195_v57 }
 0x269   :  { %1273 = vpow2.f32 %v197_v58 }
 0x274   :  { %v1272_v63 = vpop.eup %1271 }
 0x275   :  { %213 = vrot.lane.b32.xlu1 %v1272_v63, %s1323_s27 }
 0x276   :  { %v1274_v2 = vpop.eup %1273 }
 0x277   :  { %211 = vrot.lane.b32.xlu0 %v1274_v2, %s1323_s27 }
 0x279   :  { %221 = vrot.lane.b32.xlu1 %v22_v1, %s1324_s30 }
 0x27b   :  { %219 = vrot.lane.b32.xlu0 %v21_v4, %s1324_s30 }
 0x27d   :  { %367 = vrot.lane.b32.xlu1 %v1458_v60, %s1323_s27 }
 0x27f   :  { %369 = vrot.lane.b32.xlu0 %v1451_v59, %s1323_s27 }
 0x281   :  { %363 = vrot.lane.b32.xlu1 %v1472_v62, %s1323_s27 }
 0x283   :  { %365 = vrot.lane.b32.xlu0 %v1465_v61, %s1323_s27 }
 0x285   :  { %487 = vrot.lane.b32.xlu1 %v1419_v33, %s1323_s27 }
 0x287   :  { %489 = vrot.lane.b32.xlu0 %v1414_v32, %s1323_s27 }
 0x289   :  { %483 = vrot.lane.b32.xlu1 %v1433_v35, %s1323_s27 }
 0x28b   :  { %485 = vrot.lane.b32.xlu0 %v1426_v34, %s1323_s27 }
 0x2e7   :  { %v214_v8 = vpop.permute.xlu1 %213 }
 0x2e8   :  { %v230_v16 = vsel %vm228_vm12, %v227_v13, %v214_v8  ;;  %v1070_v13 = vld [vmem:[%s1614_s4 + $0x5a] ss:$0 sm:$0xff] }
 0x2e9   :  { %v212_v9 = vpop.permute.xlu0 %211 }
 0x2ea   :  { %v229_v14 = vsel %vm228_vm12, %v226_v11, %v212_v9  ;;  %v592_v9 = vld [vmem:[%s1614_s4 + $0x70] sm:$0xff]  ;;  %v591_v11 = vld [vmem:[%s1614_s4 + $0x68] sm:$0xff] }
 0x2eb   :  { %v222_v12 = vpop.permute.xlu1 %221 }
 0x2ec   :  { %v233_v21 = vsel %vm231_vm13, %v230_v16, %v222_v12  ;;  %v590_v12 = vld [vmem:[%s1614_s4 + $0x60] sm:$0xff] }
 0x2ed   :  { %v220_v15 = vpop.permute.xlu0 %219 }
 0x2ee   :  { %v232_v19 = vsel %vm231_vm13, %v229_v14, %v220_v15 }
 0x2ef   :  { %1175 = vmatprep.mubr.msk.f32.mxu1 %vm250_vm14, %v232_v19  ;;  %v368_v24 = vpop.permute.xlu1 %367 }
 0x2f0   :  { %1176 = vmatmul.mubr.msk.f32.vlgmr.msra.gmra.mxu1 %vm250_vm14, %v233_v21 }
 0x2f1   :  { %v370_v22 = vpop.permute.xlu0 %369  ;;  %1218 = vmatprep.mubr.msk.f32.mxu1 %vm1326_vm15, %v1320_v10 }
 0x2f2   :  { %1178 = vmatprep.subr.mxu0 %v370_v22 }
 0x2f3   :  { %1179 = vmatpush3.msra.mxu0 %v370_v22  ;;  %v364_v25 = vpop.permute.xlu1 %363 }
 0x2f4   :  { %1180 = vmatprep.subr.mxu0 %v368_v24 }
 0x2f5   :  { %1181 = vmatpush3.msra.mxu0 %v368_v24  ;;  %v366_v18 = vpop.permute.xlu0 %365  ;;  %v1079_v24 = vld [vmem:[%s1614_s4 + $0x5d] ss:$0 sm:$0xff] }
 0x2f6   :  { %1182 = vmatprep.subr.mxu0 %v366_v18 }
 0x2f7   :  { %1183 = vmatpush3.msra.mxu0 %v366_v18  ;;  %v488_v45 = vpop.permute.xlu1 %487 }
 0x2f8   :  { %1184 = vmatprep.subr.mxu0 %v364_v25 }
 0x2f9   :  { %1185 = vmatpush3.msra.mxu0 %v364_v25  ;;  %v490_v44 = vpop.permute.xlu0 %489 }
 0x2fa   :  { %1189 = vmatprep.subr.mxu0 %v490_v44 }
 0x2fb   :  { %v484_v48 = vpop.permute.xlu1 %483 }
 0x2fd   :  { %v486_v47 = vpop.permute.xlu0 %485 }
 0x3b0   :  { %v1177_v26 = vpop.f32.mrf.mxu1 }
 0x3b1   :  { %v333_v27 = vadd.f32 %v1177_v26, %v1059_v17 }
 0x3b2   :  { %v327_v28 = vpop.f32.mrf.mxu1 }
 0x3b3   :  { %v1064_v29 = vmul.f32 -1.442695, %v333_v27  ;;  %v328_v30 = vadd.f32 %v1059_v17, %v327_v28 }
 0x3b5   :  { %1275 = vpow2.f32 %v1064_v29  ;;  %v1063_v31 = vmul.f32 -1.442695, %v328_v30 }
 0x3b7   :  { %1277 = vpow2.f32 %v1063_v31 }
 0x3c2   :  { %v1276_v36 = vpop.eup %1275 }
 0x3c3   :  { %v343_v37 = vadd.f32 1.0, %v1276_v36 }
 0x3c4   :  { %v1278_v38 = vpop.eup %1277 }
 0x3c5   :  { %v342_v39 = vadd.f32 1.0, %v1278_v38  ;;  %1279 = vrcp.f32 %v343_v37 }
 0x3c7   :  { %1281 = vrcp.f32 %v342_v39 }
 0x3d2   :  { %v1280_v40 = vpop.eup %1279 }
 0x3d3   :  { %v349_v43 = vmul.f32 %v1280_v40, %v333_v27 }
 0x3d4   :  { %v1282_v41 = vpop.eup %1281 }
 0x3d5   :  { %v348_v42 = vmul.f32 %v1282_v41, %v328_v30  ;;  %v1325_v41 = vmov 1  }
 0x3d6   :  { %1262 = vset.pattern.permute.xlu0 %v1325_v41 }
 0x3d7   :  { %1186 = vmatprep.mubr.msk.f32.mxu0 %vm225_vm11, %v348_v42 }
 0x3d8   :  { %1187 = vmatmul.mubr.msk.f32.vlgmr.msra.gmra.mxu0 %vm225_vm11, %v349_v43 }
 0x3d9   :  { %1190 = vmatpush3.msra.mxu0 %v490_v44 }
 0x3da   :  { %1191 = vmatprep.subr.mxu0 %v488_v45 }
 0x3db   :  { %1192 = vmatpush3.msra.mxu0 %v488_v45  ;;  %v707_v45 = vadd.f32 1.0, %v1442_v46 }
 0x3dc   :  { %1193 = vmatprep.subr.mxu0 %v486_v47 }
 0x3dd   :  { %1194 = vmatpush3.msra.mxu0 %v486_v47  ;;  %v706_v47 = vadd.f32 1.0, %v1445_v52  ;;  %v1327_v52 = vmov 35  }
 0x3de   :  { %1195 = vmatprep.subr.mxu0 %v484_v48 }
 0x3df   :  { %1196 = vmatpush3.msra.mxu0 %v484_v48 }
 0x3e0   :  { %1200 = vmatprep.subr.mxu0 %v593_v49 }
 0x498   :  { %v1188_v51 = vpop.f32.mrf.mxu0 }
 0x499   :  { %v453_v53 = vadd.f32 %v1188_v51, %v1065_v50 }
 0x49a   :  { %v447_v54 = vpop.f32.mrf.mxu0 }
 0x49b   :  { %v1069_v55 = vmul.f32 -1.442695, %v453_v53  ;;  %v448_v56 = vadd.f32 %v1065_v50, %v447_v54 }
 0x49d   :  { %1283 = vpow2.f32 %v1069_v55  ;;  %v1068_v57 = vmul.f32 -1.442695, %v448_v56 }
 0x49f   :  { %1285 = vpow2.f32 %v1068_v57 }
 0x4aa   :  { %v1284_v58 = vpop.eup %1283 }
 0x4ab   :  { %v463_v63 = vadd.f32 1.0, %v1284_v58 }
 0x4ac   :  { %v1286_v1 = vpop.eup %1285 }
 0x4ad   :  { %v462_v2 = vadd.f32 1.0, %v1286_v1  ;;  %1287 = vrcp.f32 %v463_v63 }
 0x4af   :  { %1289 = vrcp.f32 %v462_v2 }
 0x4ba   :  { %v1288_v4 = vpop.eup %1287 }
 0x4bb   :  { %v1510_v8 = vmul.f32 %v1288_v4, %v453_v53 }
 0x4bc   :  { %v1290_v5 = vpop.eup %1289 }
 0x4bd   :  { %v1508_v7 = vmul.f32 %v1290_v5, %v448_v56 }
 0x4bf   :  { %1197 = vmatprep.mubr.msk.f32.mxu0 %vm225_vm11, %v1508_v7 }
 0x4c0   :  { %1198 = vmatmul.mubr.msk.f32.vlgmr.msra.gmra.mxu0 %vm225_vm11, %v1510_v8 }
 0x4c1   :  { %1201 = vmatpush3.msra.mxu0 %v593_v49  ;;  %1208 = vmatprep.mubr.msk.f32.mxu0 %vm225_vm11, %v1508_v7 }
 0x4c2   :  { %1202 = vmatprep.subr.mxu0 %v592_v9 }
 0x4c3   :  { %1203 = vmatpush3.msra.mxu0 %v592_v9 }
 0x4c4   :  { %1204 = vmatprep.subr.mxu0 %v591_v11 }
 0x4c5   :  { %1205 = vmatpush3.msra.mxu0 %v591_v11 }
 0x4c6   :  { %1206 = vmatprep.subr.mxu0 %v590_v12 }
 0x4c7   :  { %1207 = vmatpush3.msra.mxu0 %v590_v12 }
 0x4c8   :  { %1209 = vmatmul.mubr.msk.f32.vlgmr.msra.gmra.mxu0 %vm225_vm11, %v1510_v8  ;;  %1221 = vmatprep.subr.mxu0 %v1320_v10 }
 0x580   :  { %v1199_v14 = vpop.f32.mrf.mxu0 }
 0x581   :  { %v573_v15 = vadd.f32 %v1199_v14, %v1070_v13 }
 0x582   :  { %v567_v16 = vpop.f32.mrf.mxu0 }
 0x583   :  { %v1074_v19 = vmul.f32 -1.442695, %v573_v15  ;;  %v568_v21 = vadd.f32 %v1070_v13, %v567_v16 }
 0x585   :  { %1291 = vpow2.f32 %v1074_v19  ;;  %v1073_v22 = vmul.f32 -1.442695, %v568_v21 }
 0x587   :  { %1293 = vpow2.f32 %v1073_v22 }
 0x588   :  { %v1210_v18 = vpop.f32.mrf.mxu0 }
 0x589   :  { %v691_v25 = vadd.f32 %v1210_v18, %v1079_v24 }
 0x58a   :  { %v666_v42 = vpop.f32.mrf.mxu0 }
 0x58b   :  { %v1081_v17 = vmul.f32 -1.442695, %v691_v25  ;;  %v690_v43 = vadd.f32 %v1079_v24, %v666_v42  ;;  %v1085_v24 = vld [vmem:[%s1614_s4 + $0x5b] ss:$0 sm:$0xff] }
 0x58d   :  { %1295 = vpow2.f32 %v1081_v17  ;;  %v1080_v44 = vmul.f32 -1.442695, %v690_v43 }
 0x592   :  { %v1292_v26 = vpop.eup %1291 }
 0x593   :  { %v583_v27 = vadd.f32 1.0, %v1292_v26 }
 0x594   :  { %v1294_v28 = vpop.eup %1293 }
 0x595   :  { %v582_v29 = vadd.f32 1.0, %v1294_v28  ;;  %1297 = vrcp.f32 %v583_v27 }
 0x597   :  { %1299 = vrcp.f32 %v582_v29 }
 0x59a   :  { %v1296_v30 = vpop.eup %1295 }
 0x59b   :  { %v699_v31 = vadd.f32 1.0, %v1296_v30 }
 0x59d   :  { %1301 = vrcp.f32 %v699_v31 }
 0x59e   :  { %1303 = vpow2.f32 %v1080_v44 }
 0x59f   :  { %1305 = vrcp.f32 %v707_v45 }
 0x5a2   :  { %v1298_v36 = vpop.eup %1297 }
 0x5a3   :  { %v589_v39 = vmul.f32 %v1298_v36, %v573_v15 }
 0x5a4   :  { %v1300_v37 = vpop.eup %1299 }
 0x5a5   :  { %v588_v38 = vmul.f32 %v1300_v37, %v568_v21 }
 0x5a7   :  { %1211 = vmatprep.mubr.msk.f32.mxu0 %vm225_vm11, %v588_v38 }
 0x5a8   :  { %1212 = vmatmul.mubr.msk.f32.gmra.mxu0 %vm225_vm11, %v589_v39 }
 0x5a9   :  { %1237 = vmatprep.mubr.msk.f32.mxu0 %vm1326_vm15, %v1320_v10 }
 0x5aa   :  { %v1302_v40 = vpop.eup %1301 }
 0x5ab   :  { %741 = vperm.xlu1 %1261, %v1302_v40   ;;  %v1304_v49 = vpop.eup %1303 }
 0x5ac   :  { %v698_v51 = vadd.f32 1.0, %v1304_v49  ;;  %v1306_v53 = vpop.eup %1305 }
 0x5af   :  { %1263 = vset.pattern.permute.xlu1 %v1325_v41 }
 0x668   :  { %v1213_v48 = vpop.f32.mrf.mxu0 }
 0x669   :  { %1307 = vtanh.f32 %v1213_v48 }
 0x66a   :  { %v676_v50 = vpop.f32.mrf.mxu0  ;;  %1309 = vrcp.f32 %v706_v47 }
 0x66b   :  { %1311 = vtanh.f32 %v676_v50 }
 0x66c   :  { %1313 = vrcp.f32 %v698_v51 }
 0x676   :  { %v1308_v54 = vpop.eup %1307 }
 0x677   :  { %v1310_v55 = vpop.eup %1309  ;;  %v711_v56 = vmul.f32 %v1308_v54, %v1306_v53 }
 0x678   :  { %v1312_v57 = vpop.eup %1311 }
 0x679   :  { %719 = vperm.xlu0 %1262, %v711_v56   ;;  %v710_v58 = vmul.f32 %v1312_v57, %v1310_v55  ;;  %v1314_v46 = vpop.eup %1313 }
 0x67b   :  { %714 = vperm.xlu1 %1263, %v710_v58  }
 0x67d   :  { %1264 = vset.pattern.permute.xlu0 %v1319_v0  ;;  %v742_v0 = vpop.permute.xlu1 %741 }
 0x67e   :  { %736 = vperm.xlu0 %1264, %v1314_v46  }
 0x67f   :  { %854 = vrot.lane.b32.xlu1 %v1414_v32, %s1321_s0 }
 0x680   :  { %1265 = vset.pattern.permute.xlu1 %v1327_v52 }
 0x682   :  { %850 = vrot.lane.b32.xlu0 %v1426_v34, %s1321_s0  ;;  %v745_v34 = vmul.f32 %v742_v0, %v1510_v8 }
 0x683   :  { %852 = vrot.lane.b32.xlu1 %v1419_v33, %s1321_s0  ;;  %1266 = vset.pattern.permute.xlu0 %v1327_v52  ;;  %v726_v33 = vshrl.u32 %v27_v6, 7 }
 0x686   :  { %846 = vrot.lane.b32.xlu0 %v1451_v59, %s1321_s0 }
 0x687   :  { %848 = vrot.lane.b32.xlu1 %v1433_v35, %s1321_s0 }
 0x68a   :  { %842 = vrot.lane.b32.xlu0 %v1465_v61, %s1321_s0 }
 0x68b   :  { %844 = vrot.lane.b32.xlu1 %v1458_v60, %s1321_s0 }
 0x68e   :  { %840 = vrot.lane.b32.xlu0 %v1472_v62, %s1321_s0 }
 0x68f   :  { %823 = vrot.lane.b32.xlu1 %v1369_v3, %s1322_s2 }
 0x692   :  { %953 = vrot.lane.b32.xlu0 %v1458_v60, %s1322_s2 }
 0x693   :  { %955 = vrot.lane.b32.xlu1 %v1451_v59, %s1322_s2  ;;  %v1082_v59 = vld [vmem:[%s1616_s3] ss:$0 sm:$0xff] }
 0x694   :  { %vm731_vm0 = vcmp.eq.s32.totalorder %v1082_v59, %v726_v33 }
 0x695   :  { %v1083_v2 = vsel %vm731_vm0, 1.0, %v1320_v10 }
 0x696   :  { %949 = vrot.lane.b32.xlu0 %v1472_v62, %s1322_s2 }
 0x697   :  { %951 = vrot.lane.b32.xlu1 %v1465_v61, %s1322_s2 }
 0x69b   :  { %1035 = vperm.xlu1 %1265, %v1369_v3  }
 0x6f4   :  { %v720_v32 = vpop.permute.xlu0 %719 }
 0x6f5   :  { %v723_v35 = vmul.f32 %v720_v32, %v1389_v20 }
 0x6f6   :  { %v715_v60 = vpop.permute.xlu1 %714 }
 0x6f7   :  { %v747_v62 = vsel %vm225_vm11, %v745_v34, %v723_v35  ;;  %v722_v63 = vmul.f32 %v715_v60, %v1394_v23 }
 0x6f8   :  { %1215 = vmatpush3.msra.mxu1 %v747_v62 }
 0x6f9   :  { %v737_v61 = vpop.permute.xlu0 %736  ;;  %1216 = vmatprep.subr.mxu1 %v1320_v10 }
 0x6fa   :  { %v744_v6 = vmul.f32 %v737_v61, %v1508_v7  ;;  %v855_v1 = vpop.permute.xlu1 %854 }
 0x6fb   :  { %1222 = vmatpush3.msra.mxu0 %v855_v1 }
 0x6fc   :  { %v746_v20 = vsel %vm225_vm11, %v744_v6, %v722_v63  ;;  %1223 = vmatprep.subr.mxu0 %v1320_v10 }
 0x6fd   :  { %1217 = vmatpush3.msra.mxu1 %v746_v20  ;;  %v851_v4 = vpop.permute.xlu0 %850 }
 0x6fe   :  { %1219 = vmatmul.mubr.msk.f32.vlgmr.msra.gmra.mxu1 %vm748_vm1, %v1083_v2  ;;  %v853_v5 = vpop.permute.xlu1 %852  ;;  %1240 = vmatprep.subr.mxu1 %v1320_v10 }
 0x6ff   :  { %1224 = vmatpush3.msra.mxu0 %v853_v5  ;;  %1248 = vmatprep.mubr.msk.f32.mxu1 %vm1326_vm15, %v1320_v10 }
 0x700   :  { %1225 = vmatprep.subr.mxu0 %v1320_v10 }
 0x701   :  { %1226 = vmatpush3.msra.mxu0 %v851_v4  ;;  %v847_v23 = vpop.permute.xlu0 %846 }
 0x702   :  { %v849_v7 = vpop.permute.xlu1 %848  ;;  %1227 = vmatprep.subr.mxu0 %v1320_v10 }
 0x703   :  { %1228 = vmatpush3.msra.mxu0 %v849_v7 }
 0x704   :  { %1229 = vmatprep.subr.mxu0 %v1320_v10 }
 0x705   :  { %1230 = vmatpush3.msra.mxu0 %v847_v23  ;;  %v843_v8 = vpop.permute.xlu0 %842 }
 0x706   :  { %v845_v9 = vpop.permute.xlu1 %844  ;;  %1231 = vmatprep.subr.mxu0 %v1320_v10 }
 0x707   :  { %1232 = vmatpush3.msra.mxu0 %v845_v9 }
 0x708   :  { %1233 = vmatprep.subr.mxu0 %v1320_v10 }
 0x709   :  { %1234 = vmatpush3.msra.mxu0 %v843_v8  ;;  %v841_v11 = vpop.permute.xlu0 %840 }
 0x70a   :  { %v824_v12 = vpop.permute.xlu1 %823  ;;  %1235 = vmatprep.subr.mxu0 %v1320_v10 }
 0x70b   :  { %1236 = vmatpush3.msra.mxu0 %v841_v11 }
 0x70d   :  { %v954_v19 = vpop.permute.xlu0 %953 }
 0x70e   :  { %v956_v13 = vpop.permute.xlu1 %955 }
 0x70f   :  { %1241 = vmatpush3.msra.mxu1 %v956_v13 }
 0x710   :  { %1242 = vmatprep.subr.mxu1 %v1320_v10 }
 0x711   :  { %1243 = vmatpush3.msra.mxu1 %v954_v19  ;;  %v950_v22 = vpop.permute.xlu0 %949 }
 0x712   :  { %v952_v21 = vpop.permute.xlu1 %951  ;;  %1244 = vmatprep.subr.mxu1 %v1320_v10 }
 0x713   :  { %1245 = vmatpush3.msra.mxu1 %v952_v21 }
 0x714   :  { %1246 = vmatprep.subr.mxu1 %v1320_v10  ;;  %v1088_v10 = vld [vmem:[%s1614_s4 + $0x5c] ss:$0 sm:$0xff] }
 0x715   :  { %1247 = vmatpush3.msra.mxu1 %v950_v22 }
 0x716   :  { %v1036_v31 = vpop.permute.xlu1 %1035 }
 0x7be   :  { %v818_v14 = vpop.f32.mrf.mxu1 }
 0x7bf   :  { %v826_v15 = vsel %vm225_vm11, %v818_v14, %v824_v12  ;;  %v1040_v37 = vmul.f32 %v1036_v31, %v818_v14 }
 0x7c0   :  { %v1220_v16 = vpop.f32.mrf.mxu1  ;;  %1238 = vmatmul.mubr.msk.f32.vlgmr.msra.gmra.mxu0 %vm228_vm12, %v826_v15 }
 0x7c1   :  { %v1041_v41 = vadd.f32 %v1040_v37, %v1369_v3 }
 0x880   :  { %v933_v18 = vpop.f32.mrf.mxu0 }
 0x881   :  { %v934_v25 = vadd.f32 %v1085_v24, %v933_v18 }
 0x882   :  { %v1239_v17 = vpop.f32.mrf.mxu0 }
 0x883   :  { %v1087_v26 = vmul.f32 -1.442695, %v934_v25 }
 0x885   :  { %1315 = vpow2.f32 %v1087_v26 }
 0x892   :  { %v1316_v27 = vpop.eup %1315 }
 0x893   :  { %v940_v28 = vadd.f32 1.0, %v1316_v27 }
 0x895   :  { %1317 = vrcp.f32 %v940_v28 }
 0x8a2   :  { %v1318_v29 = vpop.eup %1317 }
 0x8a3   :  { %v943_v30 = vmul.f32 %v1318_v29, %v934_v25 }
 0x8a5   :  { %1249 = vmatmul.mubr.msk.f32.vlgmr.msra.gmra.mxu1 %vm225_vm11, %v943_v30 }
 0x965   :  { %v1030_v36 = vpop.f32.mrf.mxu1 }
 0x966   :  { %v1031_v38 = vadd.f32 %v1088_v10, %v1030_v36 }
 0x967   :  { %v1250_v39 = vpop.f32.mrf.mxu1 }
 0x968   :  { %v1038_v40 = vmul.f32 %v1036_v31, %v1031_v38 }
 0x96a   :  { %v1039_v42 = vadd.f32 %v1038_v40, %v1369_v3 }
 0x96c   :  { %v1042_v43 = vsel %vm225_vm11, %v1039_v42, %v1041_v41 }
 0x96d   :  { %v1044_v44 = vsel %vm1043_vm2, %v1042_v43, 0.0 }
 0x96e   :  { %1045 = vst [vmem:[%s1617_s5] sm:$0xff] %v1044_v44 }

</bundles_post_ra>
